<compile_context>
chip_gen: v7x
topology: tpu7x:2x2x1
jax: 0.10.0
libtpu: 0.0.40
codegen_flags: <defaults>
</compile_context>

<pallas_src>
import jax
import jax.numpy as jnp
from jax.experimental import pallas as pl
from jax.experimental.pallas import tpu as pltpu


def _output_attention_kernel(key_ref, value_ref, mask_ref,
                             w_kq_ref, wv_t_ref, bv_ref,
                             ctx_ref, score_ref):
    """Block-batched OutputAttentionLayer forward for one block of batch rows."""
    k = key_ref[...].astype(jnp.float32)                  # (Bb, S, A)
    v = value_ref[...].astype(jnp.float32)                # (Bb, S, A)
    mask = mask_ref[...][:, 0, :].astype(jnp.float32)     # (Bb, S)  lane-dense
    w_kq = w_kq_ref[...].astype(jnp.float32)              # (1, A)   = Wk^T @ q

    # Folded key branch: logits[b,s] = sum_a key[b,s,a] * (Wk^T @ q)[a].
    # (The bk.q constant cancels in the softmax and is dropped.)
    logits = jnp.sum(k * w_kq[None, :, :], axis=-1)       # (Bb, S)

    # Masked softmax over S; the plain-softmax denominator cancels against the
    # mask renormalization, so a single reciprocal (EUP slot) suffices.
    m = jnp.max(logits, axis=-1, keepdims=True)           # (Bb, 1)
    e = jnp.exp(logits - m)                                # (Bb, S)
    masked = e * mask                                      # (Bb, S)
    den = jnp.sum(masked, axis=-1, keepdims=True)          # (Bb, 1)
    scores = masked * pl.reciprocal(den, approx=True)      # (Bb, S)

    # Deferred value projection: ctx = (scores^T @ value) @ Wv^T + bv
    # (valid because sum_s scores[b,s] == 1 after mask renormalization).
    pooled = jnp.sum(scores[:, :, None] * v, axis=1)       # (Bb, A)
    wv_t = wv_t_ref[...]                                   # (A, A), input dtype (MXU-native)
    ctx = jnp.dot(pooled.astype(wv_t.dtype), wv_t,
                  preferred_element_type=jnp.float32)      # one MXU matmul per block
    ctx = ctx + bv_ref[...].astype(jnp.float32)            # (Bb, A)

    # Dense block stores (no per-row writes, no (...,1) masked stores).
    ctx_ref[...] = ctx[:, None, :].astype(ctx_ref.dtype)       # (Bb, 1, A)
    score_ref[...] = scores[:, None, :].astype(score_ref.dtype)  # (Bb, 1, S)


def _round_up(x, m):
    return ((x + m - 1) // m) * m


def _tile_vmem_bytes(shape, itemsize):
    """Padded VMEM bytes for a tile: last dim -> lanes (128), 2nd-last -> sublanes (8)."""
    lanes = _round_up(int(shape[-1]), 128)
    subl = _round_up(int(shape[-2]), 8) if len(shape) >= 2 else 1
    lead = 1
    for d in shape[:-2]:
        lead *= int(d)
    return lead * subl * lanes * itemsize


def _vmem_limit_bytes():
    """Scoped VMEM limit derived from the actual chip (v7x has only 64 MiB)."""
    try:
        phys = int(pltpu.get_tpu_info().vmem_capacity_bytes)
    except Exception:
        phys = 64 * 1024 * 1024           # conservative: assume v7x if query fails
    return min(int(phys * 0.6), 96 * 1024 * 1024)   # ~38 MiB on v7x, ~77 MiB on v5e/v6e


def _pick_block_b(batch, seq, attn, in_itemsize, out_itemsize, budget_bytes,
                  max_block_b=256):
    """Largest divisor of `batch` whose padded, double-buffered footprint fits."""
    def footprint(bb):
        f = 0
        f += 2 * 2 * _tile_vmem_bytes((bb, seq, attn), in_itemsize)   # key+value, dbl-buffered
        f += 2 * _tile_vmem_bytes((bb, seq, attn), 4)                 # f32 working copies
        f += 2 * _tile_vmem_bytes((bb, 1, seq), 4)                    # mask tile
        f += 2 * _tile_vmem_bytes((bb, 1, seq), out_itemsize)         # scores out
        f += 2 * _tile_vmem_bytes((bb, 1, attn), out_itemsize)        # ctx out
        f += 4 * _tile_vmem_bytes((bb, seq), 4)                       # softmax temporaries
        f += _tile_vmem_bytes((bb, attn), 4)                          # pooled
        return f

    # Keep >= 2 grid steps when possible so both v7x TensorCores get work.
    cap = batch // 2 if batch >= 2 else batch
    cap = max(1, min(cap, max_block_b))
    for cand in range(cap, 0, -1):
        if batch % cand == 0 and footprint(cand) <= budget_bytes:
            return cand
    return 1


def output_attention(key, value, masks, wk, bk, wv, bv, attn_query,
                     *, max_block_b=256):
    """JAX/Pallas equivalent of OutputAttentionLayer.forward.

    key, value: [B, S, A]; masks: [B, S]
    wk, wv: [A, A] (torch Linear weight, out x in); bk, bv: [A]
    attn_query: [A, 1]
    Returns (ctx_vecs [B, 1, A], attn_scores [B, S]).
    """
    B, S, A = key.shape
    assert value.shape == (B, S, A) and masks.shape == (B, S)
    assert wk.shape == (A, A) and wv.shape == (A, A)
    assert bk.shape == (A,) and bv.shape == (A,) and attn_query.shape == (A, 1)

    # One-time host-side algebraic folds (exact reassociations, f32 for accuracy).
    # logits = key @ Wk^T @ q + bk.q  ->  fold Wk^T @ q once; bk.q cancels in softmax.
    w_kq = (wk.astype(jnp.float32).T @ attn_query.astype(jnp.float32)).reshape(1, A)
    wv_t = wv.T                         # (in, out); keep original dtype for the MXU
    bv2 = bv.reshape(1, A)
    masks3 = masks.reshape(B, 1, S)     # free reshape; S stays lane-dense in VMEM
    del bk                              # its contribution cancels in the softmax

    vmem_limit = _vmem_limit_bytes()
    itemsize = jnp.dtype(key.dtype).itemsize
    block_b = _pick_block_b(B, S, A, itemsize, itemsize,
                            int(vmem_limit * 0.6), max_block_b)
    grid = (B // block_b,)
    out_dtype = key.dtype

    ctx, scores = pl.pallas_call(
        _output_attention_kernel,
        out_shape=(
            jax.ShapeDtypeStruct((B, 1, A), out_dtype),
            jax.ShapeDtypeStruct((B, 1, S), out_dtype),
        ),
        grid_spec=pltpu.PrefetchScalarGridSpec(
            num_scalar_prefetch=0,
            grid=grid,
            in_specs=[
                pl.BlockSpec((block_b, S, A), lambda i: (i, 0, 0)),   # key
                pl.BlockSpec((block_b, S, A), lambda i: (i, 0, 0)),   # value
                pl.BlockSpec((block_b, 1, S), lambda i: (i, 0, 0)),   # masks (lane-dense)
                pl.BlockSpec((1, A), lambda i: (0, 0)),               # Wk^T @ q (resident)
                pl.BlockSpec((A, A), lambda i: (0, 0)),               # Wv^T     (resident)
                pl.BlockSpec((1, A), lambda i: (0, 0)),               # bv       (resident)
            ],
            out_specs=(
                pl.BlockSpec((block_b, 1, A), lambda i: (i, 0, 0)),   # ctx_vecs
                pl.BlockSpec((block_b, 1, S), lambda i: (i, 0, 0)),   # attn_scores
            ),
        ),
        compiler_params=pltpu.CompilerParams(
            dimension_semantics=("parallel",),
            vmem_limit_bytes=vmem_limit,
        ),
    )(key, value, masks3, w_kq, wv_t, bv2)

    return ctx, scores.reshape(B, S)


def _reference(key, value, masks, wk, bk, wv, bv, attn_query):
    """Pure-JAX transcription of the PyTorch forward (unfused)."""
    key_mat = jnp.einsum('bsi,oi->bso', key, wk) + bk
    value_mat = jnp.einsum('bsi,oi->bso', value, wv) + bv
    kv = jnp.einsum('bsa,a->bs', key_mat, attn_query[:, 0])       # (B, S)
    kv = kv - jnp.max(kv, axis=1, keepdims=True)
    soft = jax.nn.softmax(kv, axis=1)
    masked = soft * masks
    den = jnp.sum(masked, axis=1, keepdims=True)
    scores = masked / den
    ctx = jnp.einsum('bs,bsa->ba', scores, value_mat)[:, None, :]  # (B, 1, A)
    return ctx, scores


if __name__ == "__main__":
    batch, seq, attn_size = 4, 8, 32

    keys = jax.random.split(jax.random.PRNGKey(0), 8)
    key = jax.random.normal(keys[0], (batch, seq, attn_size), dtype=jnp.float32)
    value = jax.random.normal(keys[1], (batch, seq, attn_size), dtype=jnp.float32)

    # Xavier-ish Linear params and query, deterministic.
    scale = 1.0 / jnp.sqrt(jnp.float32(attn_size))
    wk = jax.random.normal(keys[2], (attn_size, attn_size), dtype=jnp.float32) * scale
    bk = jax.random.normal(keys[3], (attn_size,), dtype=jnp.float32) * 0.1
    wv = jax.random.normal(keys[4], (attn_size, attn_size), dtype=jnp.float32) * scale
    bv = jax.random.normal(keys[5], (attn_size,), dtype=jnp.float32) * 0.1
    attn_query = jax.random.normal(keys[6], (attn_size, 1), dtype=jnp.float32) * scale

    # Masks with some padded positions (each row keeps at least one valid slot).
    lengths = jnp.array([8, 5, 8, 3], dtype=jnp.int32)
    masks = (jnp.arange(seq)[None, :] < lengths[:, None]).astype(jnp.float32)

    ctx, scores = output_attention(key, value, masks, wk, bk, wv, bv, attn_query)
    ctx = jax.block_until_ready(ctx)
    scores = jax.block_until_ready(scores)

    ctx_ref, scores_ref = _reference(key, value, masks, wk, bk, wv, bv, attn_query)

    assert ctx.shape == (batch, 1, attn_size) and scores.shape == (batch, seq)
    # Tolerance covers the approx (EUP) reciprocal + f32 reassociation of the folds.
    assert jnp.allclose(ctx, ctx_ref, atol=2e-3, rtol=2e-3), "ctx mismatch vs reference"
    assert jnp.allclose(scores, scores_ref, atol=2e-3, rtol=2e-3), "scores mismatch vs reference"

    print("KERNEL_OK")
</pallas_src>

<mosaic_0001>
module attributes {stable_mosaic.version = 11 : i64} {
  func.func @_output_attention_kernel(%arg0: i32, %arg1: memref<2x8x32xf32, #tpu.memory_space<vmem>>, %arg2: memref<2x8x32xf32, #tpu.memory_space<vmem>>, %arg3: memref<2x1x8xf32, #tpu.memory_space<vmem>>, %arg4: memref<1x32xf32, #tpu.memory_space<vmem>>, %arg5: memref<32x32xf32, #tpu.memory_space<vmem>>, %arg6: memref<1x32xf32, #tpu.memory_space<vmem>>, %arg7: memref<2x1x32xf32, #tpu.memory_space<vmem>>, %arg8: memref<2x1x8xf32, #tpu.memory_space<vmem>>) attributes {dimension_semantics = [#tpu.dimension_semantics<parallel>], iteration_bounds = array<i64: 2>, scalar_prefetch = 0 : i64, scratch_operands = 0 : i64, tpu.core_type = #tpu.core_type<tc>, window_params = [{transform_indices = @transform_0, window_bounds = array<i64: 2, 8, 32>}, {transform_indices = @transform_1, window_bounds = array<i64: 2, 8, 32>}, {transform_indices = @transform_2, window_bounds = array<i64: 2, 1, 8>}, {pipeline_mode = #tpu.pipeline_mode<synchronous>, transform_indices = @transform_3, window_bounds = array<i64: 1, 32>}, {pipeline_mode = #tpu.pipeline_mode<synchronous>, transform_indices = @transform_4, window_bounds = array<i64: 32, 32>}, {pipeline_mode = #tpu.pipeline_mode<synchronous>, transform_indices = @transform_5, window_bounds = array<i64: 1, 32>}, {transform_indices = @transform_6, window_bounds = array<i64: 2, 1, 32>}, {transform_indices = @transform_7, window_bounds = array<i64: 2, 1, 8>}]} {
    %c0 = arith.constant 0 : index
    %c0_0 = arith.constant 0 : index
    %c0_1 = arith.constant 0 : index
    %0 = vector.load %arg1[%c0, %c0_0, %c0_1] : memref<2x8x32xf32, #tpu.memory_space<vmem>>, vector<2x8x32xf32>
    %c0_2 = arith.constant 0 : index
    %c0_3 = arith.constant 0 : index
    %c0_4 = arith.constant 0 : index
    %1 = vector.load %arg2[%c0_2, %c0_3, %c0_4] : memref<2x8x32xf32, #tpu.memory_space<vmem>>, vector<2x8x32xf32>
    %c0_5 = arith.constant 0 : index
    %c0_6 = arith.constant 0 : index
    %c0_7 = arith.constant 0 : index
    %2 = vector.load %arg3[%c0_5, %c0_6, %c0_7] : memref<2x1x8xf32, #tpu.memory_space<vmem>>, vector<2x1x8xf32>
    %3 = vector.shape_cast %2 : vector<2x1x8xf32> to vector<2x8xf32>
    %c0_8 = arith.constant 0 : index
    %c0_9 = arith.constant 0 : index
    %4 = vector.load %arg4[%c0_8, %c0_9] : memref<1x32xf32, #tpu.memory_space<vmem>>, vector<1x32xf32>
    %5 = vector.shape_cast %4 : vector<1x32xf32> to vector<1x1x32xf32>
    %6 = vector.broadcast %5 : vector<1x1x32xf32> to vector<2x8x32xf32>
    %7 = arith.mulf %0, %6 : vector<2x8x32xf32>
    %cst = arith.constant dense<0.000000e+00> : vector<2x8xf32>
    %8 = vector.multi_reduction <add>, %7, %cst [2] : vector<2x8x32xf32> to vector<2x8xf32>
    %cst_10 = arith.constant dense<0xFF800000> : vector<2xf32>
    %9 = vector.multi_reduction <maximumf>, %8, %cst_10 [1] : vector<2x8xf32> to vector<2xf32>
    %10 = vector.shape_cast %9 : vector<2xf32> to vector<2x1xf32>
    %11 = vector.broadcast %10 : vector<2x1xf32> to vector<2x8xf32>
    %12 = arith.subf %8, %11 : vector<2x8xf32>
    %13 = math.exp %12 : vector<2x8xf32>
    %14 = arith.mulf %13, %3 : vector<2x8xf32>
    %cst_11 = arith.constant dense<0.000000e+00> : vector<2xf32>
    %15 = vector.multi_reduction <add>, %14, %cst_11 [1] : vector<2x8xf32> to vector<2xf32>
    %16 = vector.shape_cast %15 : vector<2xf32> to vector<2x1xf32>
    %17 = tpu.reciprocal %16 {approx = true} : vector<2x1xf32> -> vector<2x1xf32>
    %18 = vector.broadcast %17 : vector<2x1xf32> to vector<2x8xf32>
    %19 = arith.mulf %14, %18 : vector<2x8xf32>
    %20 = vector.shape_cast %19 : vector<2x8xf32> to vector<2x8x1xf32>
    %21 = vector.broadcast %20 : vector<2x8x1xf32> to vector<2x8x32xf32>
    %22 = arith.mulf %21, %1 : vector<2x8x32xf32>
    %cst_12 = arith.constant dense<0.000000e+00> : vector<2x32xf32>
    %23 = vector.multi_reduction <add>, %22, %cst_12 [1] : vector<2x8x32xf32> to vector<2x32xf32>
    %c0_13 = arith.constant 0 : index
    %c0_14 = arith.constant 0 : index
    %24 = vector.load %arg5[%c0_13, %c0_14] : memref<32x32xf32, #tpu.memory_space<vmem>>, vector<32x32xf32>
    %cst_15 = arith.constant dense<0.000000e+00> : vector<2x32xf32>
    %25 = tpu.matmul %23, %24, %cst_15 {dimension_numbers = #tpu.dot_dimension_numbers<[1], [0], [0], [1], [0, 0, 1, 1], [], []>} : vector<2x32xf32>, vector<32x32xf32>, vector<2x32xf32> -> vector<2x32xf32>
    %c0_16 = arith.constant 0 : index
    %c0_17 = arith.constant 0 : index
    %26 = vector.load %arg6[%c0_16, %c0_17] : memref<1x32xf32, #tpu.memory_space<vmem>>, vector<1x32xf32>
    %27 = vector.broadcast %26 : vector<1x32xf32> to vector<2x32xf32>
    %28 = arith.addf %25, %27 : vector<2x32xf32>
    %29 = vector.shape_cast %28 : vector<2x32xf32> to vector<2x1x32xf32>
    %c0_18 = arith.constant 0 : index
    %c0_19 = arith.constant 0 : index
    %c0_20 = arith.constant 0 : index
    %30 = vector.load %arg7[%c0_18, %c0_19, %c0_20] : memref<2x1x32xf32, #tpu.memory_space<vmem>>, vector<2x1x32xf32>
    tpu.vector_store %arg7[%c0_18, %c0_19, %c0_20], %29 {strides = array<i32>} : memref<2x1x32xf32, #tpu.memory_space<vmem>>, vector<2x1x32xf32>,
    %31 = vector.shape_cast %19 : vector<2x8xf32> to vector<2x1x8xf32>
    %c0_21 = arith.constant 0 : index
    %c0_22 = arith.constant 0 : index
    %c0_23 = arith.constant 0 : index
    %32 = vector.load %arg8[%c0_21, %c0_22, %c0_23] : memref<2x1x8xf32, #tpu.memory_space<vmem>>, vector<2x1x8xf32>
    tpu.vector_store %arg8[%c0_21, %c0_22, %c0_23], %31 {strides = array<i32>} : memref<2x1x8xf32, #tpu.memory_space<vmem>>, vector<2x1x8xf32>,
    return
  }
  func.func @transform_0(%arg0: i32) -> (i32, i32, i32) {
    %c0_i32 = arith.constant 0 : i32
    %c0_i32_0 = arith.constant 0 : i32
    %c0_i32_1 = arith.constant 0 : i32
    return %arg0, %c0_i32, %c0_i32_0 : i32, i32, i32
  }
  func.func @transform_1(%arg0: i32) -> (i32, i32, i32) {
    %c0_i32 = arith.constant 0 : i32
    %c0_i32_0 = arith.constant 0 : i32
    %c0_i32_1 = arith.constant 0 : i32
    return %arg0, %c0_i32, %c0_i32_0 : i32, i32, i32
  }
  func.func @transform_2(%arg0: i32) -> (i32, i32, i32) {
    %c0_i32 = arith.constant 0 : i32
    %c0_i32_0 = arith.constant 0 : i32
    %c0_i32_1 = arith.constant 0 : i32
    return %arg0, %c0_i32, %c0_i32_0 : i32, i32, i32
  }
  func.func @transform_3(%arg0: i32) -> (i32, i32) {
    %c0_i32 = arith.constant 0 : i32
    %c0_i32_0 = arith.constant 0 : i32
    %c0_i32_1 = arith.constant 0 : i32
    return %c0_i32, %c0_i32_0 : i32, i32
  }
  func.func @transform_4(%arg0: i32) -> (i32, i32) {
    %c0_i32 = arith.constant 0 : i32
    %c0_i32_0 = arith.constant 0 : i32
    %c0_i32_1 = arith.constant 0 : i32
    return %c0_i32, %c0_i32_0 : i32, i32
  }
  func.func @transform_5(%arg0: i32) -> (i32, i32) {
    %c0_i32 = arith.constant 0 : i32
    %c0_i32_0 = arith.constant 0 : i32
    %c0_i32_1 = arith.constant 0 : i32
    return %c0_i32, %c0_i32_0 : i32, i32
  }
  func.func @transform_6(%arg0: i32) -> (i32, i32, i32) {
    %c0_i32 = arith.constant 0 : i32
    %c0_i32_0 = arith.constant 0 : i32
    %c0_i32_1 = arith.constant 0 : i32
    return %arg0, %c0_i32, %c0_i32_0 : i32, i32, i32
  }
  func.func @transform_7(%arg0: i32) -> (i32, i32, i32) {
    %c0_i32 = arith.constant 0 : i32
    %c0_i32_0 = arith.constant 0 : i32
    %c0_i32_1 = arith.constant 0 : i32
    return %arg0, %c0_i32, %c0_i32_0 : i32, i32, i32
  }
}

</mosaic_0001>

<bundles_post_ra>
// kernel: tpu_custom_call.1
= control target key start
LH: loop header
LB: loop body
LE: loop exit
PB: predicated region body
PF: predicated region fallthrough
CT: control target
= control target key end

     0   :  { %s1559_s0 = inlined_call_operand.hbm [shape: f32[4,8,32], index: 0, kind: input, shape index: {}]   ;;  %s1560_s1 = inlined_call_operand.hbm [shape: f32[4,8,32], index: 1, kind: input, shape index: {}]   ;;  %s1561_s2 = inlined_call_operand.vmem [shape: f32[4,1,8], index: 2, kind: input, shape index: {}]   ;;  %s1562_s3 = inlined_call_operand.vmem [shape: f32[1,32], index: 3, kind: input, shape index: {}]   ;;  %s1563_s4 = inlined_call_operand.hbm [shape: f32[32,32], index: 4, kind: input, shape index: {}]   ;;  %s1564_s5 = inlined_call_operand.vmem [shape: f32[1,32], index: 5, kind: input, shape index: {}]   ;;  %s1565_s6 = inlined_call_operand.hbm [shape: f32[4,1,32], index: 6, kind: output, shape index: {0}]   ;;  %s1566_s7 = inlined_call_operand.hbm [shape: f32[4,1,8], index: 7, kind: output, shape index: {1}]  }
   0x1   :  { %1578 = sst [smem:[#allocation20_spill]] %s1559_s0 }
   0x2   :  { %1579 = sst [smem:[#allocation21_spill]] %s1563_s4 }
   0x3   :  { %13 = vsyncpa [#allocation3], 0 }
   0x4   :  { %15 = vsyncpa [#allocation3 + $0x1], 0 }
   0x5   :  { %16 = vsyncpa [#allocation6], 0 }
   0x6   :  { %18 = vsyncpa [#allocation6 + $0x1], 0 }
   0x7   :  { %19 = vsyncpa [#allocation4], 0 }
   0x8   :  { %21 = vsyncpa [#allocation4 + $0x1], 0 }
   0x9   :  { %22 = vsyncpa [#allocation10], 0 }
   0xa   :  { %24 = vsyncpa [#allocation10 + $0x1], 0  ;;  %s1222_s24 = smov 0   ;;  %s1224_s25 = smov 0  }
   0xb   :  { %s1226_s26 = smov 0   ;;  %s1228_s27 = smov 0  }
   0xc LB: > { %1580 = sst [smem:[#allocation16_spill]] %s1162_s26  ;;  %s1243_s28 = sadd.s32 4294967295, %s1166_s27   ;;  %s1166_s27 = sphi %s1228_s27, %s1602_s27   ;;  %s1162_s26 = sphi %s1226_s26, %s1604_s26   ;;  %s1158_s25 = sphi %s1224_s25, %s1606_s25   ;;  %s1154_s24 = sphi %s1222_s24, %s1605_s24  }
   0xd   : > { %s832_s29 = sadd.s32 4294967294, %s1166_s27   ;;  %p50_p0 = scmp.ne.s32.totalorder %s1158_s25, %s1154_s24 }
   0xe   : > { %p1567_p1 = scmp.eq.s32.totalorder %s1243_s28, 0  ;;  %p195_p3 = scmp.eq.s32.totalorder %s832_s29, 1 }
   0xf   : > { %p833_p5 = scmp.ge.s32.totalorder %s1166_s27, 1  ;;  %p228_p7 = scmp.lt.s32.totalorder %s1166_s27, 3 }
  0x10   : > { %p1252_p4 = por %p1567_p1, %p50_p0  ;;  %p1257_p6 = por %p195_p3, %p50_p0 }
  0x11   : > { %p1262_p8 = pnand %p833_p5, %p228_p7  ;;  %s1168_s10 = smov [#allocation7]  }
  0x12   : > { %s1581_s30 = scalar_select %p1252_p4, 1, 0 }
  0x13   : > { %s1582_s8 = scalar_select %p1257_p6, 1, 0 }
  0x14   : > { %s1584_s9 = scalar_select %p1262_p8, 1, 0 }
  0x15   : > { %1583 = sst [smem:[#allocation17_spill]] %s1582_s8  ;;  %s243_s11 = sshll.u32 %s1168_s10, 4  ;;  %s1266_s11 = int_to_ptr.vmem [resolvable:$true] %s243_s11 }
  0x16   : > { %p900_p9 = pneg %p1262_p8  ;;  %s1278_s13 = sadd.s32 1, %s1166_s27  }
  0x17   : > { %1586 = sst [smem:[#allocation18_spill]] %s1278_s13  ;;  %s37_s14 = sadd.s32 1, %s1162_s26 }
  0x18   : > { %p1273_p11 = pnand %p900_p9, %p1567_p1  ;;  %s34_s15 = ssub.s32 %s1166_s27, %s1278_s13 }
  0x19   : > { %s1587_s4 = sld [smem:[#allocation21_spill]] }
  0x1a   : > { %p974_p13 = pneg %p1273_p11 }
  0x1f   : > { %s972_s18 = scalar_lea.hbm %s1587_s4, 512 }
  0x20   : > { %p973_p12 = scmp.ne.s32.totalorder %s1587_s4, %s972_s18  ;;  %p979_p5 = scmp.lt.u32.totalorder %s972_s18, %s1587_s4 }
  0x22   : > { %p975_p0 = pnand %p974_p13, %p973_p12 }
  0x24   : > { %p976_p3 = pneg %p975_p0 }
  0x26   : > { %p981_p7 = pnand %p979_p5, %p976_p3 }
  0x28   : > { %984 = shalt.err (!%p981_p7)
}
  0x29   : > { %s985_s23 = scalar_lea.vmem %s1266_s11, 512  ;;  %p993_p2 = scmp.lt.s32.totalorder %s1266_s11, %s1266_s11 }
  0x2a   : > { %p986_p9 = scmp.ne.s32.totalorder %s1266_s11, %s985_s23  ;;  %p994_p6 = scmp.lt.s32.totalorder %s985_s23, %s985_s23 }
  0x2c   : > { %p988_p10 = pnand %p986_p9, %p974_p13  ;;  %p995_p4 = por %p994_p6, %p993_p2 }
  0x2e   : > { %p989_p1 = pneg %p988_p10 }
  0x30   : > { %p996_p8 = pnand %p995_p4, %p989_p1 }
  0x32   : > { %999 = shalt.err (!%p996_p8)
}
  0x33   : > { %s1570_s29 = smov 128   ;;  %s1572_s10 = smov 8  }
  0x34   : > { %903 = dma.hbm_to_vmem [thread:$0]  (!%p1273_p11), %s1587_s4, 512, %s1266_s11, [#allocation6], %s1570_s29, %s1570_s29, %s1572_s10  }
  0x35   : > { %p35_p1 = scmp.eq.s32.totalorder %s34_s15, 0  ;;  %p44_p2 = scmp.ne.s32.totalorder %s1162_s26, %s1158_s25 }
  0x36   : > { %p45_p4 = scmp.eq.s32.totalorder %s1166_s27, 0  ;;  %p919_p6 = scmp.lt.s32.totalorder %s1166_s27, 2 }
  0x37   : > { %s1312_s18 = scalar_select %p35_p1, %s1162_s26, %s37_s14  }
  0x38   : > { %p46_p8 = por %p45_p4, %p44_p2  ;;  %p1589_p10 = scmp.eq.s32.totalorder %s1243_s28, 1 }
  0x39   : > { %1588 = sst [smem:[#allocation19_spill]] %s1312_s18  ;;  %s260_s12 = sand.u32 1, %s1162_s26  }
  0x3a   : > { %p1316_p12 = por %p1589_p10, %p44_p2  ;;  %s862_s20 = sshll.u32 %s1166_s27, 8 }
  0x3b   : > { %s1322_s21 = sshll.u32 %s260_s12, 4  ;;  %s1591_s0 = sld [smem:[#allocation20_spill]] }
  0x3c   : > { %s264_s14 = scalar_lea.vmem [#allocation2], %s1322_s21  ;;  %p1330_p11 = pnand %p919_p6, %p46_p8 }
  0x3d   : > { %s271_s15 = sshll.u32 %s264_s14, 4  ;;  %s1339_s22 = scalar_lea.hbm %s1560_s1, %s862_s20  ;;  %s1334_s15 = int_to_ptr.vmem [resolvable:$true] %s271_s15 }
  0x3e   : > { %s1341_s23 = scalar_lea.sflag [#allocation3], %s260_s12  ;;  %p1002_p0 = pneg %p1330_p11 }
  0x41   : > { %s1327_s11 = scalar_lea.hbm %s1591_s0, %s862_s20  ;;  %s1005_s18 = scalar_lea.hbm %s1591_s0, 512 }
  0x42   : > { %s1000_s10 = scalar_lea.hbm %s1327_s11, 256  ;;  %p1006_p7 = scmp.lt.u32.totalorder %s1327_s11, %s1591_s0 }
  0x43   : > { %p1001_p13 = scmp.ne.s32.totalorder %s1327_s11, %s1000_s10  ;;  %p1007_p9 = scmp.lt.u32.totalorder %s1005_s18, %s1000_s10 }
  0x44   : > { %p1009_p2 = scmp.lt.u32.totalorder %s1000_s10, %s1327_s11 }
  0x45   : > { %p1003_p3 = pnand %p1002_p0, %p1001_p13  ;;  %p1008_p1 = por %p1007_p9, %p1006_p7 }
  0x47   : > { %p1004_p5 = pneg %p1003_p3  ;;  %p1010_p4 = por %p1009_p2, %p1008_p1 }
  0x49   : > { %p1011_p6 = pnand %p1010_p4, %p1004_p5 }
  0x4b   : > { %1014 = shalt.err (!%p1011_p6)
}
  0x4c   : > { %s1015_s29 = scalar_lea.vmem %s1334_s15, 256  ;;  %s1171_s4 = smov [#allocation2]  }
  0x4d   : > { %p1016_p8 = scmp.ne.s32.totalorder %s1334_s15, %s1015_s29  ;;  %s1020_s12 = sshll.u32 %s1171_s4, 4  ;;  %s1021_s12 = int_to_ptr.vmem [resolvable:$false] %s1020_s12 }
  0x4e   : > { %s1022_s26 = scalar_lea.vmem %s1021_s12, 512  ;;  %p1023_p3 = scmp.lt.s32.totalorder %s1334_s15, %s1021_s12 }
  0x4f   : > { %p1018_p10 = pnand %p1016_p8, %p1002_p0  ;;  %p1024_p7 = scmp.lt.s32.totalorder %s1022_s26, %s1015_s29 }
  0x51   : > { %p1019_p13 = pneg %p1018_p10  ;;  %p1025_p9 = por %p1024_p7, %p1023_p3 }
  0x53   : > { %p1026_p1 = pnand %p1025_p9, %p1019_p13 }
  0x55   : > { %1029 = shalt.err (!%p1026_p1)
}
  0x56   : > { %s1593_s13 = smov 8   ;;  %s1594_s10 = smov 128  }
  0x57   : > { %907 = dma.hbm_to_vmem [thread:$0]  (!%p1330_p11), %s1327_s11, 256, %s1334_s15, %s1341_s23, %s1594_s10, %s1594_s10, %s1593_s13  }
  0x58   : > { %s285_s18 = scalar_lea.vmem [#allocation5], %s1322_s21  ;;  %s281_s17 = sand.u32 1, %s1166_s27  }
  0x59   : > { %s292_s20 = sshll.u32 %s285_s18, 4  ;;  %s1376_s14 = scalar_lea.sflag [#allocation6], %s281_s17  ;;  %s1374_s20 = int_to_ptr.vmem [resolvable:$true] %s292_s20 }
  0x5a   : > { %s1030_s29 = scalar_lea.hbm %s1339_s22, 256  ;;  %s1035_s26 = scalar_lea.hbm %s1560_s1, 512 }
  0x5b   : > { %p1031_p5 = scmp.ne.s32.totalorder %s1339_s22, %s1030_s29  ;;  %p1036_p6 = scmp.lt.u32.totalorder %s1339_s22, %s1560_s1 }
  0x5c   : > { %p1037_p8 = scmp.lt.u32.totalorder %s1035_s26, %s1030_s29  ;;  %p1039_p13 = scmp.lt.u32.totalorder %s1030_s29, %s1339_s22 }
  0x5d   : > { %p1033_p2 = pnand %p1031_p5, %p1002_p0 }
  0x5e   : > { %p1038_p10 = por %p1037_p8, %p1036_p6 }
  0x5f   : > { %p1034_p4 = pneg %p1033_p2 }
  0x60   : > { %p1040_p3 = por %p1039_p13, %p1038_p10 }
  0x62   : > { %p1041_p7 = pnand %p1040_p3, %p1034_p4 }
  0x64   : > { %1044 = shalt.err (!%p1041_p7)
}
  0x65   : > { %s1045_s21 = scalar_lea.vmem %s1374_s20, 256  ;;  %s1172_s11 = smov [#allocation5]  }
  0x66   : > { %p1046_p9 = scmp.ne.s32.totalorder %s1374_s20, %s1045_s21  ;;  %s1050_s15 = sshll.u32 %s1172_s11, 4  ;;  %s1051_s15 = int_to_ptr.vmem [resolvable:$false] %s1050_s15 }
  0x67   : > { %s1052_s0 = scalar_lea.vmem %s1051_s15, 512  ;;  %p1053_p2 = scmp.lt.s32.totalorder %s1374_s20, %s1051_s15 }
  0x68   : > { %p1048_p1 = pnand %p1046_p9, %p1002_p0  ;;  %p1054_p6 = scmp.lt.s32.totalorder %s1052_s0, %s1045_s21 }
  0x6a   : > { %p1049_p5 = pneg %p1048_p1  ;;  %p1055_p8 = por %p1054_p6, %p1053_p2 }
  0x6c   : > { %p1056_p10 = pnand %p1055_p8, %p1049_p5 }
  0x6e   : > { %1059 = shalt.err (!%p1056_p10)
}
  0x6f   : > { %910 = dma.hbm_to_vmem [thread:$0]  (!%p1330_p11), %s1339_s22, 256, %s1374_s20, %s1376_s14, %s1594_s10, %s1594_s10, %s1593_s13  }
  0x70   : > { %p1595_p0 = scmp.ne.s32.totalorder %s1584_s9, 0 }
  0x71   : > { %s1408_s8 = sand.u32 (!%p1595_p0), 1, %s1158_s25   ;;  %p1596_p4 = scmp.ne.s32.totalorder (!%p1595_p0), %s1581_s30, 0 }
  0x72   : > { %312 = sbr.rel (%p1595_p0) target bundleno = 1119 (0x45f), region = 44  ;;  %s843_s23 = sshll.u32 (!%p1595_p0), %s1408_s8, 4 }
  0x73   : > { %s315_s18 = scalar_lea.sflag (!%p1595_p0), [#allocation3], %s1408_s8  ;;  %s318_s17 = scalar_lea.vmem (!%p1595_p0), [#allocation2], %s843_s23 }
  0x79   : > { %1133 = dma.done.wait (%p1596_p4), %s315_s18, 256  }
  0x7a   : > { %1135 = vsyncadd (%p1596_p4), %s315_s18, 4294967040  ;;  %s323_s16 = sand.u32 1, %s1243_s28   ;;  %s1417_s9 = scalar_lea.vmem [#allocation5], %s843_s23 }
  0x7b   : > { %s324_s22 = scalar_lea.sflag [#allocation6], %s323_s16 }
  0x7c   : > { %1137 = dma.done.wait (%p1596_p4), %s324_s22, 256  }
  0x7d   : > { %1139 = vsyncadd (%p1596_p4), %s324_s22, 4294967040  ;;  %p1597_p11 = scmp.eq.s32.totalorder %s1243_s28, 0 }
  0x7f   : > { %1141 = dma.done.wait (%p1597_p11), [#allocation6], 512   ;;  %p1598_p13 = pmov %p1597_p11 }
  0x80   : > { %v385_v0 = vld [vmem:[%s318_s17] sm:$0xff]  ;;  %vm400_vm0 = vcmask 261120   ;;  %v386_v2 = vld [vmem:[%s318_s17 + $0x8] sm:$0xff]  ;;  %s848_s30 = sshll.u32 %s1243_s28, 1  ;;  %v409_v8 = vlaneseq  ;;  %vm419_vm1 = vcmask 1041409   ;;  %vm422_vm2 = vcmask 58368  }
  0x81   : > { %1143 = vsyncadd (%p1598_p13), [#allocation6], 4294966784  ;;  %v849_v1 = vld [vmem:[%s1562_s3] ss:$0 sm:$0xff]  ;;  %p379_p3 = scmp.lt.s32.totalorder %s848_s30, 3  ;;  %v1173_v19 = vmov 0  }
  0x82   : > { %v398_v3 = vmul.f32 %v849_v1, %v385_v0  ;;  %v399_v4 = vmul.f32 %v849_v1, %v386_v2  ;;  %v410_v9 = vand.u32 127, %v409_v8  ;;  %v1436_v10 = vshrl.u32 %v409_v8, 7  ;;  %964 = vset.pattern.permute.xlu1 %v1173_v19  ;;  %965 = vset.pattern.permute.xlu0 %v1173_v19  ;;  %v524_v47 = vld [vmem:[#allocation7] sm:$0xff]  ;;  %v525_v48 = vld [vmem:[#allocation7 + $0x8] sm:$0xff]  ;;  %v526_v51 = vld [vmem:[#allocation7 + $0x10] sm:$0xff]  ;;  %s846_s4 = sshll.u32 %s1408_s8, 1 }
  0x83   : > { %s1608_s30 = smov (!%p379_p3, %s848_s30), 3  ;;  %v883_v49 = vpack.c.bf16 %v525_v48, %v524_v47  ;;  %v1174_v50 = vmov 0.0|0.0   ;;  %v527_v52 = vld [vmem:[#allocation7 + $0x18] sm:$0xff]  ;;  %vm1175_vm3 = vmmov 0   ;;  %v1176_v54 = vmov 0.0   ;;  %v387_v55 = vld [vmem:[%s1417_s9] sm:$0xff] }
  0x84   : > { %v401_v5 = vsel %vm400_vm0, %v398_v3, 0.0  ;;  %v404_v6 = vsel %vm400_vm0, %v399_v4, 0.0  ;;  %s381_s29 = scalar_lea.vmem %s1561_s2, %s1608_s30  ;;  %v1439_v12 = vsub.s32 %v410_v9, %v1436_v10  ;;  %v429_v20 = vsub.s32 0, %v1436_v10  ;;  %882 = vmatprep.subr.bf16.mxu0 %v1174_v50  ;;  %879 = vmatprep.mubr.msk.f32.mxu0 %vm1175_vm3, %v1176_v54  ;;  %v388_v59 = vld [vmem:[%s1417_s9 + $0x8] sm:$0xff]  ;;  %s375_s12 = scalar_lea.vmem [#allocation9], %s846_s4 }
  0x85   : > { %402 = vadd.xlane.f32.xlu0 %v401_v5  ;;  %v851_v7 = vld [vmem:[%s381_s29 + $0x1] ss:$0 sm:$0xff]  ;;  %v850_v18 = vld [vmem:[%s381_s29] ss:$0 sm:$0xff]  ;;  %v433_v21 = vsub.s32 1, %v1436_v10  ;;  %884 = vmatpush3.bf16.msra.mxu0 %v883_v49  ;;  %v886_v53 = vpack.c.bf16 %v527_v52, %v526_v51  ;;  %vm648_vm4 = vcmask 57344  }
  0x86   : > { %885 = vmatprep.subr.bf16.mxu0 %v1174_v50  ;;  %s864_s26 = sshll.u32 %s1243_s28, 5  ;;  %s686_s0 = sshll.u32 %s375_s12, 4  ;;  %s1470_s0 = int_to_ptr.vmem [resolvable:$true] %s686_s0 }
  0x87   : > { %s1468_s15 = scalar_lea.hbm %s1566_s7, %s864_s26  ;;  %s657_s23 = scalar_lea.sflag [#allocation10], %s1408_s8 }
  0x88   : > { %s1060_s18 = scalar_lea.vmem %s1470_s0, 32  ;;  %s1177_s17 = smov [#allocation9]  }
  0x89   : > { %405 = vadd.xlane.f32.xlu0 %v404_v6  ;;  %887 = vmatpush3.bf16.msra.mxu0 %v886_v53  ;;  %p1061_p7 = scmp.ne.s32.totalorder %s1470_s0, %s1060_s18  ;;  %s1064_s16 = sshll.u32 %s1177_s17, 4  ;;  %s1065_s16 = int_to_ptr.vmem [resolvable:$false] %s1064_s16 }
  0x8a   : > { %s1066_s22 = scalar_lea.vmem %s1065_s16, 64  ;;  %p1067_p5 = scmp.lt.s32.totalorder %s1470_s0, %s1065_s16 }
  0x8b   : > { %p1062_p9 = pnand %p1061_p7, %p1316_p12  ;;  %p1068_p2 = scmp.lt.s32.totalorder %s1066_s22, %s1060_s18 }
  0x8d   : > { %p1063_p1 = pneg %p1062_p9  ;;  %p1069_p6 = por %p1068_p2, %p1067_p5 }
  0x8f   : > { %p1070_p8 = pnand %p1069_p6, %p1063_p1 }
  0x9f   : > { %457 = vbcast.lane.b32.xlu0 %v851_v7, 256 }
 0x112   : > { %v403_v11 = vpop.xlane.xlu0 %402 }
 0x113   : > { %v414_v14 = vrot.slane %v403_v11, %v1439_v12 }
 0x116   : > { %v406_v13 = vpop.xlane.xlu0 %405 }
 0x117   : > { %v418_v15 = vrot.slane %v406_v13, %v1439_v12 }
 0x119   : > { %v420_v16 = vsel %vm419_vm1, %v418_v15, %v414_v14 }
 0x11a   : > { %v423_v17 = vsel %vm422_vm2, %v420_v16, -inf  ;;  %v458_v33 = vpop.permute.xlu0 %457 }
 0x11b   : > { %424 = vmax.xlane.f32.xlu1 %v423_v17 }
 0x12c   : > { %454 = vbcast.lane.b32.xlu1 %v850_v18, 256 }
 0x1a8   : > { %v425_v22 = vpop.xlane.xlu1 %424 }
 0x1a9   : > { %v430_v23 = vrot.slane %v425_v22, %v429_v20  ;;  %v434_v24 = vrot.slane %v425_v22, %v433_v21 }
 0x1ab   : > { %v437_v25 = vsub.f32 %v403_v11, %v430_v23  ;;  %v438_v26 = vsub.f32 %v406_v13, %v434_v24 }
 0x1ac   : > { %v455_v29 = vpop.permute.xlu1 %454 }
 0x1ad   : > { %v439_v27 = vmul.f32 1.442695, %v437_v25  ;;  %v441_v28 = vmul.f32 1.442695, %v438_v26 }
 0x1af   : > { %966 = vpow2.f32 %v439_v27 }
 0x1b0   : > { %968 = vpow2.f32 %v441_v28 }
 0x1b9   : > { %v967_v30 = vpop.eup %966 }
 0x1ba   : > { %v461_v31 = vmul.f32 %v967_v30, %v455_v29  ;;  %v969_v32 = vpop.eup %968 }
 0x1bb   : > { %v462_v34 = vmul.f32 %v969_v32, %v458_v33 }
 0x1bc   : > { %466 = vperm.xlu1 %964, %v461_v31  }
 0x1c0   : > { %469 = vperm.xlu1 %964, %v462_v34  }
 0x23b   : > { %v467_v35 = vpop.permute.xlu1 %466 }
 0x23c   : > { %v474_v37 = vrot.slane %v467_v35, %v1439_v12 }
 0x23f   : > { %v470_v36 = vpop.permute.xlu1 %469 }
 0x240   : > { %v478_v38 = vrot.slane %v470_v36, %v1439_v12 }
 0x242   : > { %v479_v39 = vsel %vm419_vm1, %v478_v38, %v474_v37 }
 0x243   : > { %v481_v40 = vsel %vm422_vm2, %v479_v39, 0.0 }
 0x244   : > { %482 = vadd.xlane.f32.xlu1 %v481_v40 }
 0x2d1   : > { %v483_v41 = vpop.xlane.xlu1 %482 }
 0x2d2   : > { %970 = vrcp.f32 %v483_v41 }
 0x2dc   : > { %v971_v42 = vpop.eup %970 }
 0x2dd   : > { %v489_v43 = vrot.slane %v971_v42, %v429_v20  ;;  %v493_v45 = vrot.slane %v971_v42, %v433_v21 }
 0x2df   : > { %v496_v44 = vmul.f32 %v489_v43, %v461_v31  ;;  %v497_v46 = vmul.f32 %v493_v45, %v462_v34 }
 0x2e1   : > { %500 = vperm.xlu0 %965, %v496_v44  }
 0x2e5   : > { %505 = vperm.xlu0 %965, %v497_v46  }
 0x360   : > { %v501_v56 = vpop.permute.xlu0 %500 }
 0x361   : > { %v508_v57 = vmul.f32 %v501_v56, %v387_v55  ;;  %v641_v58 = vrot.slane %v501_v56, %v1439_v12 }
 0x363   : > { %v510_v60 = vsel %vm400_vm0, %v508_v57, 0.0  ;;  %649 = vst.msk [vmem:[%s375_s12] sm:$0x1] %vm648_vm4, %v641_v58 }
 0x364   : > { %v511_v61 = vrot.slane %v510_v60, 4  ;;  %v506_v62 = vpop.permute.xlu0 %505 }
 0x365   : > { %v509_v63 = vmul.f32 %v506_v62, %v388_v59  ;;  %v645_v0 = vrot.slane %v506_v62, %v1439_v12 }
 0x366   : > { %v512_v1 = vadd.f32 %v511_v61, %v510_v60 }
 0x367   : > { %v517_v2 = vsel %vm400_vm0, %v509_v63, 0.0  ;;  %650 = vst.msk [vmem:[%s375_s12 + $0x1] sm:$0x1] %vm648_vm4, %v645_v0 }
 0x368   : > { %v513_v3 = vrot.slane %v512_v1, 2  ;;  %v518_v4 = vrot.slane %v517_v2, 4 }
 0x36a   : > { %v514_v5 = vadd.f32 %v513_v3, %v512_v1  ;;  %v519_v6 = vadd.f32 %v518_v4, %v517_v2 }
 0x36c   : > { %v520_v7 = vrot.slane %v519_v6, 2  ;;  %v515_v8 = vrot.slane %v514_v5, 1 }
 0x36e   : > { %v521_v9 = vadd.f32 %v520_v7, %v519_v6  ;;  %v516_v14 = vadd.f32 %v515_v8, %v514_v5 }
 0x370   : > { %v522_v11 = vrot.slane %v521_v9, 1 }
 0x372   : > { %v523_v13 = vadd.f32 %v522_v11, %v521_v9 }
 0x374   : > { %v537_v12 = vsel %vm419_vm1, %v523_v13, %v516_v14 }
 0x375   : > { %880 = vmatmul.mubr.msk.f32.vlgmr.msra.gmra.mrb[0].mxu0 %vm400_vm0, %v537_v12 }
 0x376   : > { %1073 = shalt.err (!%p1070_p8)
}
 0x377   : > { %s1074_s9 = scalar_lea.hbm %s1468_s15, 32  ;;  %s1078_s30 = scalar_lea.hbm %s1566_s7, 64 }
 0x378   : > { %p1075_p10 = scmp.ne.s32.totalorder %s1468_s15, %s1074_s9  ;;  %p1079_p11 = scmp.lt.u32.totalorder %s1468_s15, %s1566_s7 }
 0x379   : > { %p1080_p13 = scmp.lt.u32.totalorder %s1078_s30, %s1074_s9  ;;  %p1082_p7 = scmp.lt.u32.totalorder %s1074_s9, %s1468_s15 }
 0x37a   : > { %p1076_p0 = pnand %p1075_p10, %p1316_p12 }
 0x37b   : > { %p1081_p3 = por %p1080_p13, %p1079_p11 }
 0x37c   : > { %p1077_p4 = pneg %p1076_p0 }
 0x37d   : > { %p1083_p9 = por %p1082_p7, %p1081_p3 }
 0x37f   : > { %p1084_p1 = pnand %p1083_p9, %p1077_p4 }
 0x381   : > { %1087 = shalt.err (!%p1084_p1)
}
 0x382   : > { %s1178_s29 = smov 16   ;;  %s1179_s12 = smov 1   ;;  %v1180_v15 = vmov 1966171168   ;;  %v852_v18 = vld [vmem:[%s1564_s5] ss:$0 sm:$0xff] }
 0x383   : > { %897 = dma.vmem_to_hbm [thread:$0]  (%p1316_p12), %s1470_s0, 32, %s1468_s15, %s657_s23, %s1178_s29, %s1178_s29, %s1179_s12   ;;  %v612_v16 = vunpack.c.l.s4 %v1180_v15  ;;  %vm635_vm5 = vcmask 253952  }
 0x384   : > { %s368_s18 = scalar_lea.vmem [#allocation8], %s846_s4  ;;  %s1510_s17 = scalar_lea.hbm %s1565_s6, %s864_s26 }
 0x385   : > { %v613_v17 = vunpack.c.0.s8 %v612_v16  ;;  %s670_s15 = sshll.u32 %s368_s18, 4  ;;  %s652_s16 = scalar_lea.sflag [#allocation4], %s1408_s8  ;;  %s1512_s15 = int_to_ptr.vmem [resolvable:$true] %s670_s15 }
 0x386   : > { %s1088_s22 = scalar_lea.vmem %s1512_s15, 32  ;;  %s1181_s4 = smov [#allocation8]  }
 0x387   : > { %v616_v19 = vsub.s32 %v613_v17, %v1436_v10  ;;  %p1089_p5 = scmp.ne.s32.totalorder %s1512_s15, %s1088_s22  ;;  %s1092_s9 = sshll.u32 %s1181_s4, 4  ;;  %s1093_s9 = int_to_ptr.vmem [resolvable:$false] %s1092_s9 }
 0x388   : > { %s1094_s28 = scalar_lea.vmem %s1093_s9, 64  ;;  %p1095_p8 = scmp.lt.s32.totalorder %s1512_s15, %s1093_s9 }
 0x389   : > { %p1090_p2 = pnand %p1089_p5, %p1316_p12  ;;  %p1096_p10 = scmp.lt.s32.totalorder %s1094_s28, %s1088_s22 }
 0x38b   : > { %p1091_p6 = pneg %p1090_p2  ;;  %p1097_p0 = por %p1096_p10, %p1095_p8 }
 0x38d   : > { %p1098_p4 = pnand %p1097_p0, %p1091_p6 }
 0x448   : > { %v606_v20 = vpop.f32.mrb[0].mxu0 }
 0x449   : > { %v607_v21 = vadd.f32 %v852_v18, %v606_v20  ;;  %v881_v22 = vpop.f32.mrb[1].mxu0 }
 0x44b   : > { %v617_v23 = vrot.slane %v607_v21, %v616_v19 }
 0x44d   : > { %v618_v24 = vcombine.high %v617_v23, %v617_v23  ;;  %v625_v25 = vrot.slane %v617_v23, %v616_v19 }
 0x44f   : > { %v632_v26 = vrot.slane %v618_v24, %v616_v19  ;;  %636 = vst.msk [vmem:[%s368_s18] sm:$0x1] %vm635_vm5, %v625_v25 }
 0x451   : > { %637 = vst.msk [vmem:[%s368_s18 + $0x1] sm:$0x1] %vm635_vm5, %v632_v26 }
 0x452   : > { %1101 = shalt.err (!%p1098_p4)
}
 0x453   : > { %s1102_s26 = scalar_lea.hbm %s1510_s17, 32  ;;  %s1106_s30 = scalar_lea.hbm %s1565_s6, 64 }
 0x454   : > { %p1103_p11 = scmp.ne.s32.totalorder %s1510_s17, %s1102_s26  ;;  %p1107_p7 = scmp.lt.u32.totalorder %s1510_s17, %s1565_s6 }
 0x455   : > { %p1108_p9 = scmp.lt.u32.totalorder %s1106_s30, %s1102_s26  ;;  %p1110_p5 = scmp.lt.u32.totalorder %s1102_s26, %s1510_s17 }
 0x456   : > { %p1104_p13 = pnand %p1103_p11, %p1316_p12 }
 0x457   : > { %p1109_p1 = por %p1108_p9, %p1107_p7 }
 0x458   : > { %p1105_p3 = pneg %p1104_p13 }
 0x459   : > { %p1111_p2 = por %p1110_p5, %p1109_p1 }
 0x45b   : > { %p1112_p6 = pnand %p1111_p2, %p1105_p3 }
 0x45d   : > { %1115 = shalt.err (!%p1112_p6)
}
 0x45e   : > { %896 = dma.vmem_to_hbm [thread:$0]  (%p1316_p12), %s1512_s15, 32, %s1510_s17, %s652_s16, %s1178_s29, %s1178_s29, %s1179_s12  }
 0x45f PF: > { %s1599_s21 = sld [smem:[#allocation17_spill]]  ;;  %s701_s11 = sand.u32 1, %s1154_s24  }
 0x460   : > { %p1601_p10 = scmp.ge.s32.totalorder %s1166_s27, 2  ;;  %s702_s18 = scalar_lea.sflag [#allocation4], %s701_s11 }
 0x465   : > { %p1600_p8 = scmp.ne.s32.totalorder %s1599_s21, 0 }
 0x467   : > { %p912_p0 = pnand %p1601_p10, %p1600_p8 }
 0x469   : > { %1145 = dma.done.wait (!%p912_p0), %s702_s18, 32  }
 0x46a   : > { %1147 = vsyncadd (!%p912_p0), %s702_s18, 4294967264  ;;  %s711_s19 = scalar_lea.sflag [#allocation10], %s701_s11 }
 0x46b   : > { %1149 = dma.done.wait (!%p912_p0), %s711_s19, 32  }
 0x46c   : > { %1151 = vsyncadd (!%p912_p0), %s711_s19, 4294967264  ;;  %s1602_s27 = sld [smem:[#allocation18_spill]]  ;;  %s1603_s8 = sld [smem:[#allocation16_spill]] }
 0x46d   : > { %s1604_s26 = sld [smem:[#allocation19_spill]]  ;;  %s1605_s24 = smov %s1158_s25 }
 0x472   : > { %p27_p12 = scmp.ge.s32.totalorder %s1602_s27, 4   ;;  %s1606_s25 = smov %s1603_s8 }
 0x474   :  { %29 = sbr.rel (!%p27_p12) target bundleno = 12 (0xc), region = 126 }
 0x47b   :  { %716 = vsyncpa [#allocation3], 1 }
 0x47c   :  { %718 = vsyncpa [#allocation3 + $0x1], 1 }
 0x47d   :  { %719 = vsyncpa [#allocation6], 1 }
 0x47e   :  { %721 = vsyncpa [#allocation6 + $0x1], 1 }
 0x47f   :  { %722 = vsyncpa [#allocation4], 1 }
 0x480   :  { %724 = vsyncpa [#allocation4 + $0x1], 1 }
 0x481   :  { %725 = vsyncpa [#allocation10], 1 }
 0x482   :  { %727 = vsyncpa [#allocation10 + $0x1], 1 }

</bundles_post_ra>
